<compile_context>
chip_gen: v7x
topology: tpu7x:2x2x1
jax: 0.10.0
libtpu: 0.0.40
codegen_flags: <defaults>
</compile_context>

<pallas_src>
import math
from functools import partial

import jax
import jax.numpy as jnp
from jax import lax
from jax.experimental import pallas as pl
from jax.experimental.pallas import tpu as pltpu


def _round_up(a, b):
    return ((a + b - 1) // b) * b


def _cdiv(a, b):
    return (a + b - 1) // b


def _has_buffered():
    # Narrow, import-time feature check for pipeline_mode=pl.Buffered(...).
    if not hasattr(pl, "Buffered"):
        return False
    try:
        pl.BlockSpec((8, 128), lambda i: (0, 0), pipeline_mode=pl.Buffered(1))
        return True
    except Exception:
        return False


_HAS_BUFFERED = _has_buffered()


def _vmem_budget_bytes():
    # ~85% of per-core VMEM: ~109 MiB on v5e/v6e (128 MiB), ~54 MiB on v7x (64 MiB).
    try:
        cap = int(pltpu.get_tpu_info().vmem_capacity_bytes)
    except Exception:
        cap = 64 * 1024 * 1024
    return int(cap * 0.85)


def _gelu(x, approximate):
    if approximate:
        # tanh form -> transcendental goes to the EUP slot (VALU stays free).
        return jax.nn.gelu(x, approximate=True)
    # Exact erf form (torch.nn.GELU() default); VALU polynomial, slower on TPU.
    return 0.5 * x * (1.0 + lax.erf(x * (1.0 / math.sqrt(2.0))))


# --------------------------------------------------------------------------- #
# Kernels
# --------------------------------------------------------------------------- #

def _mlp_kernel_resident(x_ref, w1_ref, b1_ref, w2_ref, b2_ref, o_ref, *,
                         approximate):
    # 1-D grid over token tiles; W1/W2/b1/b2 fully VMEM-resident.
    h = jnp.dot(x_ref[...], w1_ref[...], preferred_element_type=jnp.float32)
    h = _gelu(h.astype(b1_ref.dtype) + b1_ref[...], approximate)
    # dropout(p=0.0) -> identity.
    y = jnp.dot(h.astype(w2_ref.dtype), w2_ref[...],
                preferred_element_type=jnp.float32)
    o_ref[...] = (y + b2_ref[...]).astype(o_ref.dtype)
    # dropout(p=0.0) -> identity.


def _mlp_kernel_sliced(x_ref, w1_ref, b1_ref, w2_ref, b2_ref, o_ref, acc_ref, *,
                       approximate):
    # 2-D grid: (token tiles [parallel], hidden slices [arbitrary]); f32 accumulator.
    kh = pl.program_id(1)

    h = jnp.dot(x_ref[...], w1_ref[...], preferred_element_type=jnp.float32)
    h = _gelu(h.astype(b1_ref.dtype) + b1_ref[...], approximate)
    part = jnp.dot(h.astype(w2_ref.dtype), w2_ref[...],
                   preferred_element_type=jnp.float32)

    @pl.when(kh == 0)
    def _():
        acc_ref[...] = part           # write on first slice (no zero-init pass)

    @pl.when(kh != 0)
    def _():
        acc_ref[...] += part          # accumulate on later slices

    @pl.when(kh == pl.num_programs(1) - 1)
    def _():
        o_ref[...] = (acc_ref[...] + b2_ref[...]).astype(o_ref.dtype)


# --------------------------------------------------------------------------- #
# Wrapper
# --------------------------------------------------------------------------- #

def _choose_tm(n, tm_max, sub_align):
    # Balanced token tile: split n into cdiv(n, tm_max) tiles, round up to the
    # dtype's sublane packing; prefer 128/256 multiples only if it adds no padding.
    nt = max(1, _cdiv(n, tm_max))
    tm_bal = _cdiv(n, nt)
    best_t, best_key = None, None
    for a in sorted({sub_align, 128, 256}, reverse=True):
        t = _round_up(tm_bal, a)
        npad = _round_up(n, t)
        key = (npad, -a)              # least padding first; tie -> larger alignment
        if best_key is None or key < best_key:
            best_key, best_t = key, t
    return best_t


def mlp_pallas(x, w1, b1, w2, b2, *, tm=None, hidden_block=None,
               gelu_approximate=True):
    """y = gelu(x @ W1 + b1) @ W2 + b2   (dropout p=0 is the identity).

    x: [..., in]; w1: [in, hid]; b1: [hid]; w2: [hid, out]; b2: [out].
    """
    orig_shape = x.shape
    in_f, hid_f = w1.shape
    out_f = w2.shape[1]

    x2 = x.reshape(-1, in_f)
    n = x2.shape[0]
    out_dtype = x.dtype

    budget = _vmem_budget_bytes()

    # bf16 elementwise (bias+GELU, fc2 LHS) when the network is bf16; f32 otherwise.
    # TODO(synk): keep f32 elementwise on v5e (no bf16 VPU) once chip detection is plumbed.
    if x.dtype == jnp.bfloat16 and w2.dtype == jnp.bfloat16:
        ew_dtype = jnp.bfloat16
    else:
        ew_dtype = jnp.float32

    x_isz = jnp.dtype(x.dtype).itemsize
    o_isz = jnp.dtype(out_dtype).itemsize
    w1_isz = jnp.dtype(w1.dtype).itemsize
    w2_isz = jnp.dtype(w2.dtype).itemsize
    ew_isz = jnp.dtype(ew_dtype).itemsize

    # ---- token tile ---------------------------------------------------------
    sub_align = max(8, 32 // x_isz)                       # 8 f32 / 16 bf16 / 32 int8
    if tm is None:
        # Bigger tiles on 128-MiB parts (v5e/v6e) for more weight reuse per stream.
        tm = 1024 if budget >= 96 * 1024 * 1024 else 512
    tm_eff = max(min(_choose_tm(n, tm, sub_align), _round_up(n, sub_align)),
                 sub_align)
    n_pad = _round_up(n, tm_eff)
    if n_pad != n:
        x2 = jnp.pad(x2, ((0, n_pad - n), (0, 0)))
    # TODO(synk): on v7x (2 TCs) prefer an even token-tile count for megacore balance.

    # ---- hidden-dim slice ---------------------------------------------------
    def vmem_est(th, resident):
        nbuf = 1 if (resident and _HAS_BUFFERED) else 2
        wslice = in_f * th * w1_isz + th * out_f * w2_isz + th * ew_isz + out_f * 4
        io = 2 * tm_eff * in_f * x_isz + 2 * tm_eff * out_f * o_isz
        acc = 0 if resident else tm_eff * out_f * 4
        inter = tm_eff * th * (4 + ew_isz)                # f32 dot result + gelu temp
        return io + nbuf * wslice + acc + inter

    if (hidden_block is not None and 0 < hidden_block < hid_f
            and hid_f % hidden_block == 0 and hidden_block % 128 == 0):
        th_eff = hidden_block
    elif 2 * vmem_est(hid_f, True) <= budget:
        th_eff = hid_f                                    # fully resident weights
    else:
        divs = [d for d in range(128, hid_f, 128) if hid_f % d == 0]
        fits = [d for d in divs if 2 * vmem_est(d, False) <= budget]
        if fits:
            th_eff = max(fits)                            # largest aligned slice that fits
        elif divs:
            th_eff = min(divs)                            # best effort
        else:
            th_eff = hid_f                                # no 128-aligned divisor
    nh = hid_f // th_eff
    resident = (nh == 1)
    if resident:
        th_eff = hid_f

    vmem_limit = int(min(budget, max(2 * vmem_est(th_eff, resident),
                                     32 * 1024 * 1024)))

    b1_2d = b1.reshape(1, hid_f).astype(ew_dtype)
    b2_2d = b2.reshape(1, out_f).astype(jnp.float32)

    def spec(shape, imap, single=False):
        if single and _HAS_BUFFERED:
            # Constant-index operand: single buffer halves its VMEM footprint.
            return pl.BlockSpec(shape, imap, pipeline_mode=pl.Buffered(1))
        return pl.BlockSpec(shape, imap)

    cost = pl.CostEstimate(
        flops=2 * n_pad * hid_f * (in_f + out_f),
        transcendentals=n_pad * hid_f,
        bytes_accessed=(n_pad * in_f * x_isz + in_f * hid_f * w1_isz
                        + hid_f * out_f * w2_isz + hid_f * ew_isz + out_f * 4
                        + n_pad * out_f * o_isz),
    )

    if resident:
        out = pl.pallas_call(
            partial(_mlp_kernel_resident, approximate=gelu_approximate),
            out_shape=jax.ShapeDtypeStruct((n_pad, out_f), out_dtype),
            grid_spec=pltpu.PrefetchScalarGridSpec(
                num_scalar_prefetch=0,
                grid=(n_pad // tm_eff,),
                in_specs=[
                    spec((tm_eff, in_f), lambda i: (i, 0)),              # x tile
                    spec((in_f, hid_f), lambda i: (0, 0), single=True),  # W1
                    spec((1, hid_f), lambda i: (0, 0), single=True),     # b1
                    spec((hid_f, out_f), lambda i: (0, 0), single=True), # W2
                    spec((1, out_f), lambda i: (0, 0), single=True),     # b2
                ],
                out_specs=spec((tm_eff, out_f), lambda i: (i, 0)),
            ),
            compiler_params=pltpu.CompilerParams(
                dimension_semantics=("parallel",),
                vmem_limit_bytes=vmem_limit,
            ),
            cost_estimate=cost,
        )(x2, w1, b1_2d, w2, b2_2d)
    else:
        out = pl.pallas_call(
            partial(_mlp_kernel_sliced, approximate=gelu_approximate),
            out_shape=jax.ShapeDtypeStruct((n_pad, out_f), out_dtype),
            grid_spec=pltpu.PrefetchScalarGridSpec(
                num_scalar_prefetch=0,
                grid=(n_pad // tm_eff, nh),
                in_specs=[
                    spec((tm_eff, in_f), lambda i, k: (i, 0)),              # x tile
                    spec((in_f, th_eff), lambda i, k: (0, k)),              # W1 slice
                    spec((1, th_eff), lambda i, k: (0, k)),                 # b1 slice
                    spec((th_eff, out_f), lambda i, k: (k, 0)),             # W2 slice
                    spec((1, out_f), lambda i, k: (0, 0), single=True),     # b2
                ],
                out_specs=spec((tm_eff, out_f), lambda i, k: (i, 0)),
                scratch_shapes=[pltpu.VMEM((tm_eff, out_f), jnp.float32)],
            ),
            compiler_params=pltpu.CompilerParams(
                dimension_semantics=("parallel", "arbitrary"),
                vmem_limit_bytes=vmem_limit,
            ),
            cost_estimate=cost,
        )(x2, w1, b1_2d, w2, b2_2d)

    if n_pad != n:
        out = out[:n]
    return out.reshape(orig_shape[:-1] + (out_f,))


def mlp_reference(x, w1, b1, w2, b2, approximate=True):
    h = jnp.dot(x.astype(jnp.float32), w1.astype(jnp.float32)) + b1.astype(jnp.float32)
    h = _gelu(h, approximate)
    y = jnp.dot(h, w2.astype(jnp.float32)) + b2.astype(jnp.float32)
    return y.astype(x.dtype)


if __name__ == "__main__":
    # Small shapes consistent with the module: tokens [B, S, C].
    B, S = 2, 8
    in_features, hidden_features, out_features = 32, 64, 32

    key = jax.random.PRNGKey(0)
    kx, k1, k2, k3, k4 = jax.random.split(key, 5)

    x = jax.random.normal(kx, (B, S, in_features), dtype=jnp.float32)

    # PyTorch Linear init bounds; weights stored transposed as [in, out] for the kernel.
    bound1 = 1.0 / math.sqrt(in_features)
    w1 = jax.random.uniform(k1, (in_features, hidden_features),
                            minval=-bound1, maxval=bound1, dtype=jnp.float32)
    b1 = jax.random.uniform(k2, (hidden_features,),
                            minval=-bound1, maxval=bound1, dtype=jnp.float32)
    bound2 = 1.0 / math.sqrt(hidden_features)
    w2 = jax.random.uniform(k3, (hidden_features, out_features),
                            minval=-bound2, maxval=bound2, dtype=jnp.float32)
    b2 = jax.random.uniform(k4, (out_features,),
                            minval=-bound2, maxval=bound2, dtype=jnp.float32)

    # Default path: resident weights, tanh-GELU (EUP).
    y = jax.block_until_ready(mlp_pallas(x, w1, b1, w2, b2))
    y_ref = mlp_reference(x, w1, b1, w2, b2, approximate=True)
    assert y.shape == (B, S, out_features)
    assert jnp.allclose(y, y_ref, atol=2e-5, rtol=2e-5), float(
        jnp.max(jnp.abs(y - y_ref)))

    # Exact-erf path (torch.nn.GELU() default parity).
    y_exact = jax.block_until_ready(mlp_pallas(x, w1, b1, w2, b2,
                                               gelu_approximate=False))
    y_ref_exact = mlp_reference(x, w1, b1, w2, b2, approximate=False)
    assert jnp.allclose(y_exact, y_ref_exact, atol=2e-5, rtol=2e-5), float(
        jnp.max(jnp.abs(y_exact - y_ref_exact)))

    # Hidden-slice (accumulator) path: hid=256 sliced into 2 x 128.
    hid2 = 256
    w1b = jax.random.uniform(k1, (in_features, hid2),
                             minval=-bound1, maxval=bound1, dtype=jnp.float32)
    b1b = jax.random.uniform(k2, (hid2,),
                             minval=-bound1, maxval=bound1, dtype=jnp.float32)
    bound2b = 1.0 / math.sqrt(hid2)
    w2b = jax.random.uniform(k3, (hid2, out_features),
                             minval=-bound2b, maxval=bound2b, dtype=jnp.float32)
    b2b = jax.random.uniform(k4, (out_features,),
                             minval=-bound2b, maxval=bound2b, dtype=jnp.float32)
    y_sl = jax.block_until_ready(mlp_pallas(x, w1b, b1b, w2b, b2b,
                                            hidden_block=128))
    y_sl_ref = mlp_reference(x, w1b, b1b, w2b, b2b, approximate=True)
    assert jnp.allclose(y_sl, y_sl_ref, atol=2e-5, rtol=2e-5), float(
        jnp.max(jnp.abs(y_sl - y_sl_ref)))

    print("KERNEL_OK")
</pallas_src>

<mosaic_0001>
module attributes {stable_mosaic.version = 11 : i64} {
  func.func @_mlp_kernel_resident(%arg0: i32, %arg1: memref<16x32xf32, #tpu.memory_space<vmem>>, %arg2: memref<32x64xf32, #tpu.memory_space<vmem>>, %arg3: memref<1x64xf32, #tpu.memory_space<vmem>>, %arg4: memref<64x32xf32, #tpu.memory_space<vmem>>, %arg5: memref<1x32xf32, #tpu.memory_space<vmem>>, %arg6: memref<16x32xf32, #tpu.memory_space<vmem>>) attributes {dimension_semantics = [#tpu.dimension_semantics<parallel>], iteration_bounds = array<i64: 1>, scalar_prefetch = 0 : i64, scratch_operands = 0 : i64, tpu.core_type = #tpu.core_type<tc>, window_params = [{transform_indices = @transform_0, window_bounds = array<i64: 16, 32>}, {pipeline_mode = #tpu.pipeline_mode<synchronous>, transform_indices = @transform_1, window_bounds = array<i64: 32, 64>}, {pipeline_mode = #tpu.pipeline_mode<synchronous>, transform_indices = @transform_2, window_bounds = array<i64: 1, 64>}, {pipeline_mode = #tpu.pipeline_mode<synchronous>, transform_indices = @transform_3, window_bounds = array<i64: 64, 32>}, {pipeline_mode = #tpu.pipeline_mode<synchronous>, transform_indices = @transform_4, window_bounds = array<i64: 1, 32>}, {transform_indices = @transform_5, window_bounds = array<i64: 16, 32>}]} {
    %c0 = arith.constant 0 : index
    %c0_0 = arith.constant 0 : index
    %0 = vector.load %arg1[%c0, %c0_0] : memref<16x32xf32, #tpu.memory_space<vmem>>, vector<16x32xf32>
    %c0_1 = arith.constant 0 : index
    %c0_2 = arith.constant 0 : index
    %1 = vector.load %arg2[%c0_1, %c0_2] : memref<32x64xf32, #tpu.memory_space<vmem>>, vector<32x64xf32>
    %cst = arith.constant dense<0.000000e+00> : vector<16x64xf32>
    %2 = tpu.matmul %0, %1, %cst {dimension_numbers = #tpu.dot_dimension_numbers<[1], [0], [0], [1], [0, 0, 1, 1], [], []>} : vector<16x32xf32>, vector<32x64xf32>, vector<16x64xf32> -> vector<16x64xf32>
    %c0_3 = arith.constant 0 : index
    %c0_4 = arith.constant 0 : index
    %3 = vector.load %arg3[%c0_3, %c0_4] : memref<1x64xf32, #tpu.memory_space<vmem>>, vector<1x64xf32>
    %4 = vector.broadcast %3 : vector<1x64xf32> to vector<16x64xf32>
    %5 = arith.addf %2, %4 : vector<16x64xf32>
    %6 = arith.mulf %5, %5 : vector<16x64xf32>
    %7 = arith.mulf %5, %6 : vector<16x64xf32>
    %cst_5 = arith.constant 4.471500e-02 : f32
    %8 = vector.broadcast %cst_5 : f32 to vector<16x64xf32>
    %9 = arith.mulf %8, %7 : vector<16x64xf32>
    %10 = arith.addf %5, %9 : vector<16x64xf32>
    %cst_6 = arith.constant 0.797884583 : f32
    %11 = vector.broadcast %cst_6 : f32 to vector<16x64xf32>
    %12 = arith.mulf %11, %10 : vector<16x64xf32>
    %13 = math.tanh %12 : vector<16x64xf32>
    %cst_7 = arith.constant 1.000000e+00 : f32
    %14 = vector.broadcast %cst_7 : f32 to vector<16x64xf32>
    %15 = arith.addf %14, %13 : vector<16x64xf32>
    %cst_8 = arith.constant 5.000000e-01 : f32
    %16 = vector.broadcast %cst_8 : f32 to vector<16x64xf32>
    %17 = arith.mulf %16, %15 : vector<16x64xf32>
    %18 = arith.mulf %5, %17 : vector<16x64xf32>
    %c0_9 = arith.constant 0 : index
    %c0_10 = arith.constant 0 : index
    %19 = vector.load %arg4[%c0_9, %c0_10] : memref<64x32xf32, #tpu.memory_space<vmem>>, vector<64x32xf32>
    %cst_11 = arith.constant dense<0.000000e+00> : vector<16x32xf32>
    %20 = tpu.matmul %18, %19, %cst_11 {dimension_numbers = #tpu.dot_dimension_numbers<[1], [0], [0], [1], [0, 0, 1, 1], [], []>} : vector<16x64xf32>, vector<64x32xf32>, vector<16x32xf32> -> vector<16x32xf32>
    %c0_12 = arith.constant 0 : index
    %c0_13 = arith.constant 0 : index
    %21 = vector.load %arg5[%c0_12, %c0_13] : memref<1x32xf32, #tpu.memory_space<vmem>>, vector<1x32xf32>
    %22 = vector.broadcast %21 : vector<1x32xf32> to vector<16x32xf32>
    %23 = arith.addf %20, %22 : vector<16x32xf32>
    %c0_14 = arith.constant 0 : index
    %c0_15 = arith.constant 0 : index
    %24 = vector.load %arg6[%c0_14, %c0_15] : memref<16x32xf32, #tpu.memory_space<vmem>>, vector<16x32xf32>
    tpu.vector_store %arg6[%c0_14, %c0_15], %23 {strides = array<i32>} : memref<16x32xf32, #tpu.memory_space<vmem>>, vector<16x32xf32>,
    return
  }
  func.func @transform_0(%arg0: i32) -> (i32, i32) {
    %c0_i32 = arith.constant 0 : i32
    %c0_i32_0 = arith.constant 0 : i32
    return %arg0, %c0_i32 : i32, i32
  }
  func.func @transform_1(%arg0: i32) -> (i32, i32) {
    %c0_i32 = arith.constant 0 : i32
    %c0_i32_0 = arith.constant 0 : i32
    %c0_i32_1 = arith.constant 0 : i32
    return %c0_i32, %c0_i32_0 : i32, i32
  }
  func.func @transform_2(%arg0: i32) -> (i32, i32) {
    %c0_i32 = arith.constant 0 : i32
    %c0_i32_0 = arith.constant 0 : i32
    %c0_i32_1 = arith.constant 0 : i32
    return %c0_i32, %c0_i32_0 : i32, i32
  }
  func.func @transform_3(%arg0: i32) -> (i32, i32) {
    %c0_i32 = arith.constant 0 : i32
    %c0_i32_0 = arith.constant 0 : i32
    %c0_i32_1 = arith.constant 0 : i32
    return %c0_i32, %c0_i32_0 : i32, i32
  }
  func.func @transform_4(%arg0: i32) -> (i32, i32) {
    %c0_i32 = arith.constant 0 : i32
    %c0_i32_0 = arith.constant 0 : i32
    %c0_i32_1 = arith.constant 0 : i32
    return %c0_i32, %c0_i32_0 : i32, i32
  }
  func.func @transform_5(%arg0: i32) -> (i32, i32) {
    %c0_i32 = arith.constant 0 : i32
    %c0_i32_0 = arith.constant 0 : i32
    return %arg0, %c0_i32 : i32, i32
  }
}

</mosaic_0001>

<bundles_post_ra>
// kernel: tpu_custom_call.1
= control target key start
LH: loop header
LB: loop body
LE: loop exit
PB: predicated region body
PF: predicated region fallthrough
CT: control target
= control target key end

     0   :  { %vm34_vm0 = vcmask 261120   ;;  %s453_s0 = inlined_call_operand.vmem [shape: f32[16,32], index: 0, kind: input, shape index: {}]   ;;  %s454_s1 = inlined_call_operand.vmem [shape: f32[32,64], index: 1, kind: input, shape index: {}]   ;;  %s455_s2 = inlined_call_operand.vmem [shape: f32[1,64], index: 2, kind: input, shape index: {}]   ;;  %s456_s3 = inlined_call_operand.vmem [shape: f32[64,32], index: 3, kind: input, shape index: {}]   ;;  %s457_s4 = inlined_call_operand.vmem [shape: f32[1,32], index: 4, kind: input, shape index: {}]   ;;  %s458_s5 = inlined_call_operand.hbm [shape: f32[16,32], index: 5, kind: output, shape index: {}]  }
   0x1   :  { %v23_v0 = vld [vmem:[%s454_s1] sm:$0xff]  ;;  %v24_v1 = vld [vmem:[%s454_s1 + $0x8] sm:$0xff]  ;;  %v25_v2 = vld [vmem:[%s454_s1 + $0x10] sm:$0xff] }
   0x2   :  { %v301_v3 = vpack.c.bf16 %v24_v1, %v23_v0  ;;  %v26_v4 = vld [vmem:[%s454_s1 + $0x18] sm:$0xff]  ;;  %v21_v5 = vld [vmem:[%s453_s0] sm:$0xff] }
   0x3   :  { %v305_v6 = vpack.c.bf16 %v26_v4, %v25_v2  ;;  %279 = vmatprep.mubr.msk.f32.mxu0 %vm34_vm0, %v21_v5 }
   0x4   :  { %10 = vsyncpa [#allocation3], 0  ;;  %302 = vmatprep.subr.bf16.mxu0 %v301_v3  ;;  %v22_v7 = vld [vmem:[%s453_s0 + $0x8] sm:$0xff]  ;;  %v134_v8 = vld [vmem:[%s456_s3] sm:$0xff]  ;;  %vm149_vm1 = vcmask 523264   ;;  %s356_s21 = smov [#allocation2]  }
   0x5   :  { %304 = vmatpush3.bf16.msra.mxu0 %v301_v3  ;;  %v135_v9 = vld [vmem:[%s456_s3 + $0x8] sm:$0xff]  ;;  %v136_v10 = vld [vmem:[%s456_s3 + $0x10] sm:$0xff]  ;;  %v137_v12 = vld [vmem:[%s456_s3 + $0x18] sm:$0xff]  ;;  %s238_s22 = sshll.u32 %s356_s21, 4  ;;  %s239_s22 = int_to_ptr.vmem [resolvable:$true] %s238_s22 }
   0x6   :  { %306 = vmatprep.subr.bf16.mxu0 %v305_v6  ;;  %v309_v11 = vpack.c.bf16 %v135_v9, %v134_v8  ;;  %v313_v13 = vpack.c.bf16 %v137_v12, %v136_v10  ;;  %v138_v14 = vld [vmem:[%s456_s3 + $0x20] sm:$0xff]  ;;  %v139_v15 = vld [vmem:[%s456_s3 + $0x28] sm:$0xff]  ;;  %v140_v17 = vld [vmem:[%s456_s3 + $0x30] sm:$0xff]  ;;  %s332_s23 = scalar_lea.vmem %s239_s22, 256  ;;  %p337_p1 = scmp.lt.s32.totalorder %s239_s22, %s239_s22 }
   0x7   :  { %v317_v16 = vpack.c.bf16 %v139_v15, %v138_v14  ;;  %v141_v18 = vld [vmem:[%s456_s3 + $0x38] sm:$0xff]  ;;  %v249_v20 = vld [vmem:[%s455_s2] ss:$0 sm:$0xff]  ;;  %p333_p0 = scmp.ne.s32.totalorder %s239_s22, %s332_s23  ;;  %p338_p2 = scmp.lt.s32.totalorder %s332_s23, %s332_s23 }
   0x8   :  { %310 = vmatprep.subr.bf16.mxu1 %v309_v11  ;;  %v321_v19 = vpack.c.bf16 %v141_v18, %v140_v17  ;;  %v252_v43 = vld [vmem:[%s457_s4] ss:$0 sm:$0xff] }
   0x9   :  { %308 = vmatpush3.bf16.msra.mxu0 %v305_v6  ;;  %312 = vmatpush3.bf16.msra.mxu1 %v309_v11  ;;  %p339_p3 = por %p338_p2, %p337_p1 }
   0xa   :  { %314 = vmatprep.subr.bf16.mxu1 %v313_v13 }
   0xb   :  { %p340_p4 = pnand %p339_p3, %p333_p0 }
   0xc   :  { %280 = vmatmul.mubr.msk.f32.vlgmr.msra.gmra.mrb[0].mxu0 %vm34_vm0, %v22_v7 }
   0xd   :  { %316 = vmatpush3.bf16.msra.mxu1 %v313_v13 }
   0xe   :  { %318 = vmatprep.subr.bf16.mxu1 %v317_v16 }
  0x11   :  { %320 = vmatpush3.bf16.msra.mxu1 %v317_v16 }
  0x12   :  { %322 = vmatprep.subr.bf16.mxu1 %v321_v19 }
  0x15   :  { %324 = vmatpush3.bf16.msra.mxu1 %v321_v19 }
  0xdf   :  { %v281_v21 = vpop.f32.mrb[0].mxu0 }
  0xe0   :  { %v113_v22 = vadd.f32 %v281_v21, %v249_v20  ;;  %v107_v23 = vpop.f32.mrb[1].mxu0 }
  0xe1   :  { %v108_v24 = vadd.f32 %v249_v20, %v107_v23 }
  0xe2   :  { %v117_v25 = vmul.f32 %v113_v22, %v113_v22 }
  0xe3   :  { %v116_v26 = vmul.f32 %v108_v24, %v108_v24 }
  0xe4   :  { %v119_v27 = vmul.f32 %v117_v25, %v113_v22 }
  0xe5   :  { %v118_v28 = vmul.f32 %v116_v26, %v108_v24 }
  0xe6   :  { %v121_v29 = vmul.f32 0.044715, %v119_v27 }
  0xe7   :  { %v120_v30 = vmul.f32 0.044715, %v118_v28 }
  0xe8   :  { %v123_v31 = vadd.f32 %v121_v29, %v113_v22 }
  0xe9   :  { %v122_v32 = vadd.f32 %v120_v30, %v108_v24 }
  0xea   :  { %v125_v33 = vmul.f32 0.7978846, %v123_v31 }
  0xeb   :  { %v124_v34 = vmul.f32 0.7978846, %v122_v32 }
  0xec   :  { %328 = vtanh.f32 %v125_v33 }
  0xed   :  { %330 = vtanh.f32 %v124_v34 }
  0xf6   :  { %v329_v35 = vpop.eup %328 }
  0xf7   :  { %v331_v36 = vpop.eup %330  ;;  %v129_v37 = vadd.f32 1.0, %v329_v35 }
  0xf8   :  { %v128_v38 = vadd.f32 1.0, %v331_v36 }
  0xf9   :  { %v131_v39 = vmul.f32 0.5, %v129_v37 }
  0xfa   :  { %v130_v40 = vmul.f32 0.5, %v128_v38 }
  0xfb   :  { %v133_v42 = vmul.f32 %v131_v39, %v113_v22 }
  0xfc   :  { %v132_v41 = vmul.f32 %v130_v40, %v108_v24 }
  0xfe   :  { %298 = vmatprep.mubr.msk.f32.mxu1 %vm149_vm1, %v132_v41 }
  0xff   :  { %299 = vmatmul.mubr.msk.f32.vlgmr.msra.gmra.mrb[0].mxu1 %vm149_vm1, %v133_v42 }
 0x1d2   :  { %v300_v44 = vpop.f32.mrb[0].mxu1 }
 0x1d3   :  { %v228_v45 = vadd.f32 %v300_v44, %v252_v43  ;;  %v222_v46 = vpop.f32.mrb[1].mxu1 }
 0x1d4   :  { %v223_v47 = vadd.f32 %v252_v43, %v222_v46 }
 0x1d5   :  { %232 = vst.msk [vmem:[#allocation2 + $0x8] sm:$0xff] %vm34_vm0, %v228_v45 }
 0x1d6   :  { %231 = vst.msk [vmem:[#allocation2] sm:$0xff] %vm34_vm0, %v223_v47 }
 0x1d7   :  { %343 = shalt.err (!%p340_p4)
}
 0x1d8   :  { %s344_s25 = scalar_lea.hbm %s458_s5, 256 }
 0x1d9   :  { %p345_p5 = scmp.ne.s32.totalorder %s458_s5, %s344_s25  ;;  %p348_p6 = scmp.lt.u32.totalorder %s344_s25, %s458_s5 }
 0x1db   :  { %p350_p7 = pnand %p348_p6, %p345_p5 }
 0x1dd   :  { %353 = shalt.err (!%p350_p7)
}
 0x1de   :  { %s357_s30 = smov 128   ;;  %s358_s1 = smov 8  }
 0x1df   :  { %244 = dma.vmem_to_hbm [thread:$0]  %s239_s22, 256, %s458_s5, [#allocation3], %s357_s30, %s357_s30, %s358_s1  }
 0x1e0   :  { %354 = dma.done.wait [#allocation3], 256  }
 0x1e1   :  { %355 = vsyncadd [#allocation3], 4294967040 }
 0x1e2   :  { %248 = vsyncpa [#allocation3], 1 }

</bundles_post_ra>
